<compile_context>
chip_gen: v5e
topology: v5e:2x2
jax: 0.10.0
libtpu: 0.0.40
codegen_flags: <defaults>
</compile_context>

<pallas_src>
import jax
import jax.numpy as jnp
import numpy as np
from jax import lax
from jax.experimental import pallas as pl
from jax.experimental.pallas import tpu as pltpu

EPS = 1e-3  # BatchNorm2d eps=0.001


def _conv_stats_kernel(xp_ref, xn_ref, we_ref, wo_ref, b2_ref, y_ref, s_ref, ss_ref):
    """Polyphase deconv + bias + partial BN stats for one (batch, row-tile) block.

    xp_ref : (TR, W+1, Cin) f32   input rows r    (zero column appended on the right)
    xn_ref : (TR, W+1, Cin) f32   input rows r+1  (zero row at the bottom)
    we_ref : (2, Cin, 2*Cout) bf16  taps for even output rows, cols = [even | odd] phase
    wo_ref : (4, Cin, 2*Cout) bf16  taps for odd  output rows, cols = [even | odd] phase
    b2_ref : (1, 2*Cout) f32        conv bias duplicated for both column phases
    y_ref  : (TR, 2, W, 2*Cout) bf16  pre-BN conv output (NHWC-contiguous layout)
    s_ref  : (1, 2*Cout) f32        partial per-(col-phase, channel) sum
    ss_ref : (1, 2*Cout) f32        partial per-(col-phase, channel) sum of squares
    """
    TR, Wp1, _ = xp_ref.shape
    W = Wp1 - 1
    C2 = b2_ref.shape[1]
    bias2 = b2_ref[...]  # (1, C2), hoisted (tiny)

    def mm(x, w):
        return jnp.dot(x, w, preferred_element_type=jnp.float32)

    def row(i, carry):
        s, ss = carry
        # 2D slices only: (W, Cin), cast to bf16 right before the MXU.
        a = xp_ref[i, pl.ds(0, W), :].astype(jnp.bfloat16)    # x[r,   c]
        ar = xp_ref[i, pl.ds(1, W), :].astype(jnp.bfloat16)   # x[r,   c+1]
        b = xn_ref[i, pl.ds(0, W), :].astype(jnp.bfloat16)    # x[r+1, c]
        br = xn_ref[i, pl.ds(1, W), :].astype(jnp.bfloat16)   # x[r+1, c+1]

        # Even output row 2r:  [out[2r,2c] | out[2r,2c+1]] stacked along channels.
        ye = mm(a, we_ref[0]) + mm(ar, we_ref[1]) + bias2
        # Odd output row 2r+1: [out[2r+1,2c] | out[2r+1,2c+1]].
        yo = (mm(a, wo_ref[0]) + mm(ar, wo_ref[1])
              + mm(b, wo_ref[2]) + mm(br, wo_ref[3]) + bias2)

        y_ref[i, 0, :, :] = ye.astype(y_ref.dtype)
        y_ref[i, 1, :, :] = yo.astype(y_ref.dtype)

        s = s + jnp.sum(ye, axis=0, keepdims=True) + jnp.sum(yo, axis=0, keepdims=True)
        ss = (ss + jnp.sum(ye * ye, axis=0, keepdims=True)
              + jnp.sum(yo * yo, axis=0, keepdims=True))
        return s, ss

    zero = jnp.zeros((1, C2), jnp.float32)
    s, ss = lax.fori_loop(0, TR, row, (zero, zero))
    s_ref[...] = s
    ss_ref[...] = ss


def _bn_relu_kernel(y_ref, sc_ref, sh_ref, o_ref):
    """Lane-dense BN (folded into one FMA) + ReLU over a (rows, OW*Cout) slab."""
    y = y_ref[...].astype(jnp.float32)
    o_ref[...] = jnp.maximum(y * sc_ref[...] + sh_ref[...], 0.0)


def _pick_row_tile(H, W, Cin, Cout, budget=6 * 1024 * 1024):
    """Input rows per grid step, sized so double-buffered blocks stay well under VMEM."""
    C2 = 2 * Cout

    def nbytes(tr):
        in_b = 2 * tr * (W + 1) * Cin * 4   # xp + xn f32 blocks
        out_b = tr * 2 * W * C2 * 2         # bf16 pre-BN output block
        return 2 * (in_b + out_b)           # double-buffered

    best = 1
    for t in range(1, H + 1):
        if H % t == 0 and nbytes(t) <= budget:
            best = t
    return best


def _pick_slab_tile(R, OWC, budget=6 * 1024 * 1024):
    """Rows per grid step for the BN+ReLU slab pass (multiple of 16 for bf16 tiling)."""
    def nbytes(tp):
        return 2 * (tp * OWC * 2 + tp * OWC * 4)   # bf16 in + f32 out, double-buffered

    best = None
    for t in range(16, R + 1, 16):
        if R % t == 0 and nbytes(t) <= budget:
            best = t
    return best if best is not None else R


def upsampler_block_nhwc(x_nhwc, w_t, bias, gamma, beta):
    """x_nhwc: (N, H, W, Cin).  w_t: ConvTranspose2d weight (Cin, Cout, 3, 3)."""
    N, H, W, Cin = x_nhwc.shape
    Cout = w_t.shape[1]
    OH, OW = 2 * H, 2 * W
    OWC = OW * Cout
    C2 = 2 * Cout

    # Halo plumbing (pure glue, done by XLA): zero column on the right for the c+1 taps,
    # and a one-row-down-shifted copy for the r+1 taps (no overlapping BlockSpec windows).
    x32 = x_nhwc.astype(jnp.float32)
    xp = jnp.pad(x32, ((0, 0), (0, 0), (0, 1), (0, 0)))
    xn = jnp.pad(xp[:, 1:, :, :], ((0, 0), (0, 1), (0, 0), (0, 0)))

    # Polyphase-packed weights, W[kh,kw] := w_t[:, :, kh, kw] (Cin, Cout):
    #   out[2r,   2c]   = x[r,c]W11
    #   out[2r,   2c+1] = x[r,c+1]W10 + x[r,c]W12
    #   out[2r+1, 2c]   = x[r+1,c]W01 + x[r,c]W21
    #   out[2r+1, 2c+1] = x[r+1,c+1]W00 + x[r+1,c]W02 + x[r,c+1]W20 + x[r,c]W22
    Wt = w_t.astype(jnp.float32)

    def tap(kh, kw):
        return Wt[:, :, kh, kw]

    Z = jnp.zeros((Cin, Cout), jnp.float32)
    we = jnp.stack([
        jnp.concatenate([tap(1, 1), tap(1, 2)], axis=1),   # for x[r, c]
        jnp.concatenate([Z,         tap(1, 0)], axis=1),   # for x[r, c+1]
    ]).astype(jnp.bfloat16)                                 # (2, Cin, 2*Cout)
    wo = jnp.stack([
        jnp.concatenate([tap(2, 1), tap(2, 2)], axis=1),   # x[r, c]
        jnp.concatenate([Z,         tap(2, 0)], axis=1),   # x[r, c+1]
        jnp.concatenate([tap(0, 1), tap(0, 2)], axis=1),   # x[r+1, c]
        jnp.concatenate([Z,         tap(0, 0)], axis=1),   # x[r+1, c+1]
    ]).astype(jnp.bfloat16)                                 # (4, Cin, 2*Cout)
    b2 = jnp.concatenate([bias, bias]).astype(jnp.float32).reshape(1, C2)

    TR = _pick_row_tile(H, W, Cin, Cout)
    T = H // TR

    y, ps, pss = pl.pallas_call(
        _conv_stats_kernel,
        grid=(N, T),
        in_specs=[
            pl.BlockSpec((None, TR, W + 1, Cin), lambda n, t: (n, t, 0, 0)),
            pl.BlockSpec((None, TR, W + 1, Cin), lambda n, t: (n, t, 0, 0)),
            pl.BlockSpec((2, Cin, C2), lambda n, t: (0, 0, 0)),
            pl.BlockSpec((4, Cin, C2), lambda n, t: (0, 0, 0)),
            pl.BlockSpec((1, C2), lambda n, t: (0, 0)),
        ],
        out_specs=[
            pl.BlockSpec((None, TR, 2, W, C2), lambda n, t: (n, t, 0, 0, 0)),
            pl.BlockSpec((None, None, 1, C2), lambda n, t: (n, t, 0, 0)),
            pl.BlockSpec((None, None, 1, C2), lambda n, t: (n, t, 0, 0)),
        ],
        out_shape=[
            jax.ShapeDtypeStruct((N, H, 2, W, C2), jnp.bfloat16),
            jax.ShapeDtypeStruct((N, T, 1, C2), jnp.float32),
            jax.ShapeDtypeStruct((N, T, 1, C2), jnp.float32),
        ],
        compiler_params=pltpu.CompilerParams(
            dimension_semantics=("parallel", "parallel"),
            vmem_limit_bytes=32 * 1024 * 1024),
    )(xp, xn, we, wo, b2)

    # BN finalize over the full (N, OH, OW) extent -> fold into one scale/shift FMA.
    # Tiny (Cout,)-sized math, kept in plain JAX between the two pallas_calls.
    cnt = jnp.float32(N * OH * OW)
    s_c = ps.sum(axis=(0, 1, 2)).reshape(2, Cout).sum(axis=0)
    q_c = pss.sum(axis=(0, 1, 2)).reshape(2, Cout).sum(axis=0)
    mean = s_c / cnt
    var = jnp.maximum(q_c / cnt - mean * mean, 0.0)   # biased batch variance (training mode)
    scale_c = gamma.astype(jnp.float32) * lax.rsqrt(var + EPS)
    shift_c = beta.astype(jnp.float32) - mean * scale_c
    scale_row = jnp.tile(scale_c, OW).reshape(1, OWC)
    shift_row = jnp.tile(shift_c, OW).reshape(1, OWC)

    # (N, H, 2, W, 2*Cout) is already NHWC-contiguous -> free reshape to a lane-dense slab.
    R = N * OH
    y_slab = y.reshape(R, OWC)
    TP = _pick_slab_tile(R, OWC)

    out_slab = pl.pallas_call(
        _bn_relu_kernel,
        grid=(R // TP,),
        in_specs=[
            pl.BlockSpec((TP, OWC), lambda i: (i, 0)),
            pl.BlockSpec((1, OWC), lambda i: (0, 0)),
            pl.BlockSpec((1, OWC), lambda i: (0, 0)),
        ],
        out_specs=pl.BlockSpec((TP, OWC), lambda i: (i, 0)),
        out_shape=jax.ShapeDtypeStruct((R, OWC), jnp.float32),
        compiler_params=pltpu.CompilerParams(
            dimension_semantics=("parallel",),
            vmem_limit_bytes=32 * 1024 * 1024),
    )(y_slab, scale_row, shift_row)

    return out_slab.reshape(N, OH, OW, Cout)


def upsampler_block(x_nchw, w_t, bias, gamma, beta):
    """NCHW wrapper matching the PyTorch module interface.

    The boundary transposes exist only for NCHW parity; in an NHWC-native graph call
    upsampler_block_nhwc directly and they disappear.
    """
    x = jnp.transpose(x_nchw, (0, 2, 3, 1))
    y = upsampler_block_nhwc(x, w_t, bias, gamma, beta)
    return jnp.transpose(y, (0, 3, 1, 2)).astype(x_nchw.dtype)


def reference(x, w_t, bias, gamma, beta):
    """Pure-JAX reference matching PyTorch semantics (NCHW, f32)."""
    Cout = w_t.shape[1]
    w_conv = jnp.transpose(w_t, (1, 0, 2, 3))[:, :, ::-1, ::-1]  # (Cout, Cin, 3, 3)
    dn = lax.conv_dimension_numbers(x.shape, w_conv.shape, ("NCHW", "OIHW", "NCHW"))
    y = lax.conv_general_dilated(
        x, w_conv, window_strides=(1, 1), padding=((1, 2), (1, 2)),
        lhs_dilation=(2, 2), dimension_numbers=dn,
        precision=lax.Precision.HIGHEST)
    y = y + bias.reshape(1, Cout, 1, 1)
    mean = jnp.mean(y, axis=(0, 2, 3), keepdims=True)
    var = jnp.mean((y - mean) ** 2, axis=(0, 2, 3), keepdims=True)
    y = (y - mean) * lax.rsqrt(var + EPS)
    y = y * gamma.reshape(1, Cout, 1, 1) + beta.reshape(1, Cout, 1, 1)
    return jnp.maximum(y, 0.0)


if __name__ == "__main__":
    N, Cin, Cout, H, W = 2, 4, 8, 16, 16

    key = jax.random.PRNGKey(0)
    k1, k2, k3, k4, k5 = jax.random.split(key, 5)
    x = jax.random.normal(k1, (N, Cin, H, W), jnp.float32)
    w_t = jax.random.normal(k2, (Cin, Cout, 3, 3), jnp.float32) * 0.1  # (Cin, Cout, kH, kW)
    bias = jax.random.normal(k3, (Cout,), jnp.float32) * 0.1
    gamma = 1.0 + jax.random.normal(k4, (Cout,), jnp.float32) * 0.1
    beta = jax.random.normal(k5, (Cout,), jnp.float32) * 0.1

    fn = jax.jit(upsampler_block)
    out = jax.block_until_ready(fn(x, w_t, bias, gamma, beta))
    ref = jax.block_until_ready(reference(x, w_t, bias, gamma, beta))

    assert out.shape == (N, Cout, 2 * H, 2 * W), out.shape
    # bf16 MXU operands / bf16 intermediate vs f32-HIGHEST reference -> bf16-level tolerance.
    np.testing.assert_allclose(np.asarray(out), np.asarray(ref), rtol=2e-2, atol=2e-2)
    print("KERNEL_OK")
</pallas_src>

<mosaic_0001>
module attributes {stable_mosaic.version = 11 : i64} {
  func.func @_conv_stats_kernel(%arg0: i32, %arg1: i32, %arg2: memref<1x16x17x4xf32, #tpu.memory_space<vmem>>, %arg3: memref<1x16x17x4xf32, #tpu.memory_space<vmem>>, %arg4: memref<2x4x16xbf16, #tpu.memory_space<vmem>>, %arg5: memref<4x4x16xbf16, #tpu.memory_space<vmem>>, %arg6: memref<1x16xf32, #tpu.memory_space<vmem>>, %arg7: memref<1x16x2x16x16xbf16, #tpu.memory_space<vmem>>, %arg8: memref<1x1x1x16xf32, #tpu.memory_space<vmem>>, %arg9: memref<1x1x1x16xf32, #tpu.memory_space<vmem>>) attributes {dimension_semantics = [#tpu.dimension_semantics<parallel>, #tpu.dimension_semantics<parallel>], iteration_bounds = array<i64: 2, 1>, scalar_prefetch = 0 : i64, scratch_operands = 0 : i64, tpu.core_type = #tpu.core_type<tc>, window_params = [{transform_indices = @transform_0, window_bounds = array<i64: 1, 16, 17, 4>}, {transform_indices = @transform_1, window_bounds = array<i64: 1, 16, 17, 4>}, {pipeline_mode = #tpu.pipeline_mode<synchronous>, transform_indices = @transform_2, window_bounds = array<i64: 2, 4, 16>}, {pipeline_mode = #tpu.pipeline_mode<synchronous>, transform_indices = @transform_3, window_bounds = array<i64: 4, 4, 16>}, {pipeline_mode = #tpu.pipeline_mode<synchronous>, transform_indices = @transform_4, window_bounds = array<i64: 1, 16>}, {transform_indices = @transform_5, window_bounds = array<i64: 1, 16, 2, 16, 16>}, {transform_indices = @transform_6, window_bounds = array<i64: 1, 1, 1, 16>}, {transform_indices = @transform_7, window_bounds = array<i64: 1, 1, 1, 16>}]} {
    %c0 = arith.constant 0 : index
    %c0_0 = arith.constant 0 : index
    %0 = vector.load %arg6[%c0, %c0_0] : memref<1x16xf32, #tpu.memory_space<vmem>>, vector<1x16xf32>
    %cst = arith.constant 0.000000e+00 : f32
    %1 = vector.broadcast %cst : f32 to vector<1x16xf32>
    %c0_i32 = arith.constant 0 : i32
    %c16_i32 = arith.constant 16 : i32
    %2 = arith.addi %c0_i32, %c16_i32 : i32
    %c1_i32 = arith.constant 1 : i32
    %3:2 = scf.for %arg10 = %c0_i32 to %2 step %c1_i32 iter_args(%arg11 = %1, %arg12 = %1) -> (vector<1x16xf32>, vector<1x16xf32>)  : i32 {
      %c0_10 = arith.constant 0 : index
      %10 = arith.index_cast %arg10 : i32 to index
      %c0_11 = arith.constant 0 : index
      %c0_12 = arith.constant 0 : index
      %11 = vector.load %arg2[%c0_10, %10, %c0_11, %c0_12] : memref<1x16x17x4xf32, #tpu.memory_space<vmem>>, vector<1x1x16x4xf32>
      %12 = vector.shape_cast %11 : vector<1x1x16x4xf32> to vector<16x4xf32>
      %13 = arith.truncf %12 : vector<16x4xf32> to vector<16x4xbf16>
      %c0_13 = arith.constant 0 : index
      %14 = arith.index_cast %arg10 : i32 to index
      %c1 = arith.constant 1 : index
      %c0_14 = arith.constant 0 : index
      %15 = vector.load %arg2[%c0_13, %14, %c1, %c0_14] : memref<1x16x17x4xf32, #tpu.memory_space<vmem>>, vector<1x1x16x4xf32>
      %16 = vector.shape_cast %15 : vector<1x1x16x4xf32> to vector<16x4xf32>
      %17 = arith.truncf %16 : vector<16x4xf32> to vector<16x4xbf16>
      %c0_15 = arith.constant 0 : index
      %18 = arith.index_cast %arg10 : i32 to index
      %c0_16 = arith.constant 0 : index
      %c0_17 = arith.constant 0 : index
      %19 = vector.load %arg3[%c0_15, %18, %c0_16, %c0_17] : memref<1x16x17x4xf32, #tpu.memory_space<vmem>>, vector<1x1x16x4xf32>
      %20 = vector.shape_cast %19 : vector<1x1x16x4xf32> to vector<16x4xf32>
      %21 = arith.truncf %20 : vector<16x4xf32> to vector<16x4xbf16>
      %c0_18 = arith.constant 0 : index
      %22 = arith.index_cast %arg10 : i32 to index
      %c1_19 = arith.constant 1 : index
      %c0_20 = arith.constant 0 : index
      %23 = vector.load %arg3[%c0_18, %22, %c1_19, %c0_20] : memref<1x16x17x4xf32, #tpu.memory_space<vmem>>, vector<1x1x16x4xf32>
      %24 = vector.shape_cast %23 : vector<1x1x16x4xf32> to vector<16x4xf32>
      %25 = arith.truncf %24 : vector<16x4xf32> to vector<16x4xbf16>
      %c0_21 = arith.constant 0 : index
      %c0_22 = arith.constant 0 : index
      %c0_23 = arith.constant 0 : index
      %26 = vector.load %arg4[%c0_21, %c0_22, %c0_23] : memref<2x4x16xbf16, #tpu.memory_space<vmem>>, vector<1x4x16xbf16>
      %27 = vector.shape_cast %26 : vector<1x4x16xbf16> to vector<4x16xbf16>
      %cst_24 = arith.constant dense<0.000000e+00> : vector<16x16xf32>
      %28 = tpu.matmul %13, %27, %cst_24 {dimension_numbers = #tpu.dot_dimension_numbers<[1], [0], [0], [1], [0, 0, 1, 1], [], []>} : vector<16x4xbf16>, vector<4x16xbf16>, vector<16x16xf32> -> vector<16x16xf32>
      %c1_25 = arith.constant 1 : index
      %c0_26 = arith.constant 0 : index
      %c0_27 = arith.constant 0 : index
      %29 = vector.load %arg4[%c1_25, %c0_26, %c0_27] : memref<2x4x16xbf16, #tpu.memory_space<vmem>>, vector<1x4x16xbf16>
      %30 = vector.shape_cast %29 : vector<1x4x16xbf16> to vector<4x16xbf16>
      %cst_28 = arith.constant dense<0.000000e+00> : vector<16x16xf32>
      %31 = tpu.matmul %17, %30, %cst_28 {dimension_numbers = #tpu.dot_dimension_numbers<[1], [0], [0], [1], [0, 0, 1, 1], [], []>} : vector<16x4xbf16>, vector<4x16xbf16>, vector<16x16xf32> -> vector<16x16xf32>
      %32 = arith.addf %28, %31 : vector<16x16xf32>
      %33 = vector.broadcast %0 : vector<1x16xf32> to vector<16x16xf32>
      %34 = arith.addf %32, %33 : vector<16x16xf32>
      %c0_29 = arith.constant 0 : index
      %c0_30 = arith.constant 0 : index
      %c0_31 = arith.constant 0 : index
      %35 = vector.load %arg5[%c0_29, %c0_30, %c0_31] : memref<4x4x16xbf16, #tpu.memory_space<vmem>>, vector<1x4x16xbf16>
      %36 = vector.shape_cast %35 : vector<1x4x16xbf16> to vector<4x16xbf16>
      %cst_32 = arith.constant dense<0.000000e+00> : vector<16x16xf32>
      %37 = tpu.matmul %13, %36, %cst_32 {dimension_numbers = #tpu.dot_dimension_numbers<[1], [0], [0], [1], [0, 0, 1, 1], [], []>} : vector<16x4xbf16>, vector<4x16xbf16>, vector<16x16xf32> -> vector<16x16xf32>
      %c1_33 = arith.constant 1 : index
      %c0_34 = arith.constant 0 : index
      %c0_35 = arith.constant 0 : index
      %38 = vector.load %arg5[%c1_33, %c0_34, %c0_35] : memref<4x4x16xbf16, #tpu.memory_space<vmem>>, vector<1x4x16xbf16>
      %39 = vector.shape_cast %38 : vector<1x4x16xbf16> to vector<4x16xbf16>
      %cst_36 = arith.constant dense<0.000000e+00> : vector<16x16xf32>
      %40 = tpu.matmul %17, %39, %cst_36 {dimension_numbers = #tpu.dot_dimension_numbers<[1], [0], [0], [1], [0, 0, 1, 1], [], []>} : vector<16x4xbf16>, vector<4x16xbf16>, vector<16x16xf32> -> vector<16x16xf32>
      %41 = arith.addf %37, %40 : vector<16x16xf32>
      %c2 = arith.constant 2 : index
      %c0_37 = arith.constant 0 : index
      %c0_38 = arith.constant 0 : index
      %42 = vector.load %arg5[%c2, %c0_37, %c0_38] : memref<4x4x16xbf16, #tpu.memory_space<vmem>>, vector<1x4x16xbf16>
      %43 = vector.shape_cast %42 : vector<1x4x16xbf16> to vector<4x16xbf16>
      %cst_39 = arith.constant dense<0.000000e+00> : vector<16x16xf32>
      %44 = tpu.matmul %21, %43, %cst_39 {dimension_numbers = #tpu.dot_dimension_numbers<[1], [0], [0], [1], [0, 0, 1, 1], [], []>} : vector<16x4xbf16>, vector<4x16xbf16>, vector<16x16xf32> -> vector<16x16xf32>
      %45 = arith.addf %41, %44 : vector<16x16xf32>
      %c3 = arith.constant 3 : index
      %c0_40 = arith.constant 0 : index
      %c0_41 = arith.constant 0 : index
      %46 = vector.load %arg5[%c3, %c0_40, %c0_41] : memref<4x4x16xbf16, #tpu.memory_space<vmem>>, vector<1x4x16xbf16>
      %47 = vector.shape_cast %46 : vector<1x4x16xbf16> to vector<4x16xbf16>
      %cst_42 = arith.constant dense<0.000000e+00> : vector<16x16xf32>
      %48 = tpu.matmul %25, %47, %cst_42 {dimension_numbers = #tpu.dot_dimension_numbers<[1], [0], [0], [1], [0, 0, 1, 1], [], []>} : vector<16x4xbf16>, vector<4x16xbf16>, vector<16x16xf32> -> vector<16x16xf32>
      %49 = arith.addf %45, %48 : vector<16x16xf32>
      %50 = vector.broadcast %0 : vector<1x16xf32> to vector<16x16xf32>
      %51 = arith.addf %49, %50 : vector<16x16xf32>
      %52 = arith.truncf %34 : vector<16x16xf32> to vector<16x16xbf16>
      %c0_43 = arith.constant 0 : index
      %53 = arith.index_cast %arg10 : i32 to index
      %c0_44 = arith.constant 0 : index
      %c0_45 = arith.constant 0 : index
      %c0_46 = arith.constant 0 : index
      %54 = vector.load %arg7[%c0_43, %53, %c0_44, %c0_45, %c0_46] : memref<1x16x2x16x16xbf16, #tpu.memory_space<vmem>>, vector<1x1x1x16x16xbf16>
      %55 = vector.shape_cast %54 : vector<1x1x1x16x16xbf16> to vector<16x16xbf16>
      %56 = vector.shape_cast %52 : vector<16x16xbf16> to vector<1x1x1x16x16xbf16>
      tpu.vector_store %arg7[%c0_43, %53, %c0_44, %c0_45, %c0_46], %56 {strides = array<i32>} : memref<1x16x2x16x16xbf16, #tpu.memory_space<vmem>>, vector<1x1x1x16x16xbf16>,
      %57 = arith.truncf %51 : vector<16x16xf32> to vector<16x16xbf16>
      %c0_47 = arith.constant 0 : index
      %58 = arith.index_cast %arg10 : i32 to index
      %c1_48 = arith.constant 1 : index
      %c0_49 = arith.constant 0 : index
      %c0_50 = arith.constant 0 : index
      %59 = vector.load %arg7[%c0_47, %58, %c1_48, %c0_49, %c0_50] : memref<1x16x2x16x16xbf16, #tpu.memory_space<vmem>>, vector<1x1x1x16x16xbf16>
      %60 = vector.shape_cast %59 : vector<1x1x1x16x16xbf16> to vector<16x16xbf16>
      %61 = vector.shape_cast %57 : vector<16x16xbf16> to vector<1x1x1x16x16xbf16>
      tpu.vector_store %arg7[%c0_47, %58, %c1_48, %c0_49, %c0_50], %61 {strides = array<i32>} : memref<1x16x2x16x16xbf16, #tpu.memory_space<vmem>>, vector<1x1x1x16x16xbf16>,
      %cst_51 = arith.constant dense<0.000000e+00> : vector<16xf32>
      %62 = vector.multi_reduction <add>, %34, %cst_51 [0] : vector<16x16xf32> to vector<16xf32>
      %63 = vector.shape_cast %62 : vector<16xf32> to vector<1x16xf32>
      %64 = arith.addf %arg11, %63 : vector<1x16xf32>
      %cst_52 = arith.constant dense<0.000000e+00> : vector<16xf32>
      %65 = vector.multi_reduction <add>, %51, %cst_52 [0] : vector<16x16xf32> to vector<16xf32>
      %66 = vector.shape_cast %65 : vector<16xf32> to vector<1x16xf32>
      %67 = arith.addf %64, %66 : vector<1x16xf32>
      %68 = arith.mulf %34, %34 : vector<16x16xf32>
      %cst_53 = arith.constant dense<0.000000e+00> : vector<16xf32>
      %69 = vector.multi_reduction <add>, %68, %cst_53 [0] : vector<16x16xf32> to vector<16xf32>
      %70 = vector.shape_cast %69 : vector<16xf32> to vector<1x16xf32>
      %71 = arith.addf %arg12, %70 : vector<1x16xf32>
      %72 = arith.mulf %51, %51 : vector<16x16xf32>
      %cst_54 = arith.constant dense<0.000000e+00> : vector<16xf32>
      %73 = vector.multi_reduction <add>, %72, %cst_54 [0] : vector<16x16xf32> to vector<16xf32>
      %74 = vector.shape_cast %73 : vector<16xf32> to vector<1x16xf32>
      %75 = arith.addf %71, %74 : vector<1x16xf32>
      scf.yield %67, %75 : vector<1x16xf32>, vector<1x16xf32>
    }
    %c16_i32_1 = arith.constant 16 : i32
    %c0_2 = arith.constant 0 : index
    %c0_3 = arith.constant 0 : index
    %c0_4 = arith.constant 0 : index
    %c0_5 = arith.constant 0 : index
    %4 = vector.load %arg8[%c0_2, %c0_3, %c0_4, %c0_5] : memref<1x1x1x16xf32, #tpu.memory_space<vmem>>, vector<1x1x1x16xf32>
    %5 = vector.shape_cast %4 : vector<1x1x1x16xf32> to vector<1x16xf32>
    %6 = vector.shape_cast %3#0 : vector<1x16xf32> to vector<1x1x1x16xf32>
    tpu.vector_store %arg8[%c0_2, %c0_3, %c0_4, %c0_5], %6 {strides = array<i32>} : memref<1x1x1x16xf32, #tpu.memory_space<vmem>>, vector<1x1x1x16xf32>,
    %c0_6 = arith.constant 0 : index
    %c0_7 = arith.constant 0 : index
    %c0_8 = arith.constant 0 : index
    %c0_9 = arith.constant 0 : index
    %7 = vector.load %arg9[%c0_6, %c0_7, %c0_8, %c0_9] : memref<1x1x1x16xf32, #tpu.memory_space<vmem>>, vector<1x1x1x16xf32>
    %8 = vector.shape_cast %7 : vector<1x1x1x16xf32> to vector<1x16xf32>
    %9 = vector.shape_cast %3#1 : vector<1x16xf32> to vector<1x1x1x16xf32>
    tpu.vector_store %arg9[%c0_6, %c0_7, %c0_8, %c0_9], %9 {strides = array<i32>} : memref<1x1x1x16xf32, #tpu.memory_space<vmem>>, vector<1x1x1x16xf32>,
    return
  }
  func.func @transform_0(%arg0: i32, %arg1: i32) -> (i32, i32, i32, i32) {
    %c0_i32 = arith.constant 0 : i32
    %c0_i32_0 = arith.constant 0 : i32
    %c0_i32_1 = arith.constant 0 : i32
    return %arg0, %arg1, %c0_i32, %c0_i32_0 : i32, i32, i32, i32
  }
  func.func @transform_1(%arg0: i32, %arg1: i32) -> (i32, i32, i32, i32) {
    %c0_i32 = arith.constant 0 : i32
    %c0_i32_0 = arith.constant 0 : i32
    %c0_i32_1 = arith.constant 0 : i32
    return %arg0, %arg1, %c0_i32, %c0_i32_0 : i32, i32, i32, i32
  }
  func.func @transform_2(%arg0: i32, %arg1: i32) -> (i32, i32, i32) {
    %c0_i32 = arith.constant 0 : i32
    %c0_i32_0 = arith.constant 0 : i32
    %c0_i32_1 = arith.constant 0 : i32
    %c0_i32_2 = arith.constant 0 : i32
    return %c0_i32, %c0_i32_0, %c0_i32_1 : i32, i32, i32
  }
  func.func @transform_3(%arg0: i32, %arg1: i32) -> (i32, i32, i32) {
    %c0_i32 = arith.constant 0 : i32
    %c0_i32_0 = arith.constant 0 : i32
    %c0_i32_1 = arith.constant 0 : i32
    %c0_i32_2 = arith.constant 0 : i32
    return %c0_i32, %c0_i32_0, %c0_i32_1 : i32, i32, i32
  }
  func.func @transform_4(%arg0: i32, %arg1: i32) -> (i32, i32) {
    %c0_i32 = arith.constant 0 : i32
    %c0_i32_0 = arith.constant 0 : i32
    %c0_i32_1 = arith.constant 0 : i32
    return %c0_i32, %c0_i32_0 : i32, i32
  }
  func.func @transform_5(%arg0: i32, %arg1: i32) -> (i32, i32, i32, i32, i32) {
    %c0_i32 = arith.constant 0 : i32
    %c0_i32_0 = arith.constant 0 : i32
    %c0_i32_1 = arith.constant 0 : i32
    %c0_i32_2 = arith.constant 0 : i32
    return %arg0, %arg1, %c0_i32, %c0_i32_0, %c0_i32_1 : i32, i32, i32, i32, i32
  }
  func.func @transform_6(%arg0: i32, %arg1: i32) -> (i32, i32, i32, i32) {
    %c0_i32 = arith.constant 0 : i32
    %c0_i32_0 = arith.constant 0 : i32
    %c0_i32_1 = arith.constant 0 : i32
    return %arg0, %arg1, %c0_i32, %c0_i32_0 : i32, i32, i32, i32
  }
  func.func @transform_7(%arg0: i32, %arg1: i32) -> (i32, i32, i32, i32) {
    %c0_i32 = arith.constant 0 : i32
    %c0_i32_0 = arith.constant 0 : i32
    %c0_i32_1 = arith.constant 0 : i32
    return %arg0, %arg1, %c0_i32, %c0_i32_0 : i32, i32, i32, i32
  }
}

module attributes {stable_mosaic.version = 11 : i64} {
  func.func @_bn_relu_kernel(%arg0: i32, %arg1: memref<64x256xbf16, #tpu.memory_space<vmem>>, %arg2: memref<1x256xf32, #tpu.memory_space<vmem>>, %arg3: memref<1x256xf32, #tpu.memory_space<vmem>>, %arg4: memref<64x256xf32, #tpu.memory_space<vmem>>) attributes {dimension_semantics = [#tpu.dimension_semantics<parallel>], iteration_bounds = array<i64: 1>, scalar_prefetch = 0 : i64, scratch_operands = 0 : i64, tpu.core_type = #tpu.core_type<tc>, window_params = [{transform_indices = @transform_0, window_bounds = array<i64: 64, 256>}, {pipeline_mode = #tpu.pipeline_mode<synchronous>, transform_indices = @transform_1, window_bounds = array<i64: 1, 256>}, {pipeline_mode = #tpu.pipeline_mode<synchronous>, transform_indices = @transform_2, window_bounds = array<i64: 1, 256>}, {transform_indices = @transform_3, window_bounds = array<i64: 64, 256>}]} {
    %c0 = arith.constant 0 : index
    %c0_0 = arith.constant 0 : index
    %0 = vector.load %arg1[%c0, %c0_0] : memref<64x256xbf16, #tpu.memory_space<vmem>>, vector<64x256xbf16>
    %1 = arith.extf %0 : vector<64x256xbf16> to vector<64x256xf32>
    %c0_1 = arith.constant 0 : index
    %c0_2 = arith.constant 0 : index
    %2 = vector.load %arg2[%c0_1, %c0_2] : memref<1x256xf32, #tpu.memory_space<vmem>>, vector<1x256xf32>
    %3 = vector.broadcast %2 : vector<1x256xf32> to vector<64x256xf32>
    %4 = arith.mulf %1, %3 : vector<64x256xf32>
    %c0_3 = arith.constant 0 : index
    %c0_4 = arith.constant 0 : index
    %5 = vector.load %arg3[%c0_3, %c0_4] : memref<1x256xf32, #tpu.memory_space<vmem>>, vector<1x256xf32>
    %6 = vector.broadcast %5 : vector<1x256xf32> to vector<64x256xf32>
    %7 = arith.addf %4, %6 : vector<64x256xf32>
    %cst = arith.constant 0.000000e+00 : f32
    %8 = vector.broadcast %cst : f32 to vector<64x256xf32>
    %9 = arith.maximumf %7, %8 : vector<64x256xf32>
    %c0_5 = arith.constant 0 : index
    %c0_6 = arith.constant 0 : index
    %10 = vector.load %arg4[%c0_5, %c0_6] : memref<64x256xf32, #tpu.memory_space<vmem>>, vector<64x256xf32>
    tpu.vector_store %arg4[%c0_5, %c0_6], %9 {strides = array<i32>} : memref<64x256xf32, #tpu.memory_space<vmem>>, vector<64x256xf32>,
    return
  }
  func.func @transform_0(%arg0: i32) -> (i32, i32) {
    %c0_i32 = arith.constant 0 : i32
    %c0_i32_0 = arith.constant 0 : i32
    return %arg0, %c0_i32 : i32, i32
  }
  func.func @transform_1(%arg0: i32) -> (i32, i32) {
    %c0_i32 = arith.constant 0 : i32
    %c0_i32_0 = arith.constant 0 : i32
    %c0_i32_1 = arith.constant 0 : i32
    return %c0_i32, %c0_i32_0 : i32, i32
  }
  func.func @transform_2(%arg0: i32) -> (i32, i32) {
    %c0_i32 = arith.constant 0 : i32
    %c0_i32_0 = arith.constant 0 : i32
    %c0_i32_1 = arith.constant 0 : i32
    return %c0_i32, %c0_i32_0 : i32, i32
  }
  func.func @transform_3(%arg0: i32) -> (i32, i32) {
    %c0_i32 = arith.constant 0 : i32
    %c0_i32_0 = arith.constant 0 : i32
    return %arg0, %c0_i32 : i32, i32
  }
}

</mosaic_0001>

<bundles_post_ra>
// kernel: tile.19
= control target key start
LH: loop header
LB: loop body
LE: loop exit
PB: predicated region body
PF: predicated region fallthrough
CT: control target
= control target key end

     0   :  { %s7_s6 = smov 3  ;;  %s21_s9 = smov 3  ;;  %vm4_vm0 = vcmask 64512   ;;  %vm11_vm1 = vcmask 1048512   ;;  %vm18_vm2 = vcmask 982912   ;;  %vm25_vm3 = vcmask 917312   ;;  %s233_s0 = inlined_call_operand.vmem [shape: f32[32,8], index: 0, kind: input, shape index: {}]   ;;  %s234_s1 = inlined_call_operand.vmem [shape: f32[1,256], index: 1, kind: output, shape index: {}]  }
   0x1   :  { %v123_v0 = vld [vmem:[%s233_s0 + $0xf] ss:$16 sm:%s7_s6]   ;;  %s154_s10 = smov 120   ;;  %v125_v1 = vld [vmem:[%s233_s0 + $0xd] ss:$16 sm:%s21_s9]   ;;  %s155_s13 = smov 104  }
   0x2   :  { %9 = vrot.lane.b32.xlu0 %v123_v0, %s154_s10  ;;  %23 = vrot.lane.b32.xlu1 %v125_v1, %s155_s13  ;;  %s14_s14 = smov 3  ;;  %s28_s15 = smov 3  ;;  %vm32_vm4 = vcmask 851712   ;;  %vm39_vm5 = vcmask 786112   ;;  %vm46_vm6 = vcmask 720512   ;;  %vm53_vm7 = vcmask 654912  }
   0x3   :  { %v124_v2 = vld [vmem:[%s233_s0 + $0xe] ss:$16 sm:%s14_s14]   ;;  %v126_v3 = vld [vmem:[%s233_s0 + $0xc] ss:$16 sm:%s28_s15]   ;;  %s35_s20 = smov 3  ;;  %s156_s23 = smov 112  }
   0x4   :  { %v127_v4 = vld [vmem:[%s233_s0 + $0xb] ss:$16 sm:%s35_s20]   ;;  %s157_s24 = smov 88   ;;  %s158_s25 = smov 96   ;;  %vm60_vm8 = vcmask 589312   ;;  %vm67_vm9 = vcmask 523712  }
   0x5   :  { %37 = vrot.lane.b32.xlu2 %v127_v4, %s157_s24  ;;  %s49_s26 = smov 3  ;;  %s42_s27 = smov 3  ;;  %vm74_vm10 = vcmask 458112   ;;  %vm81_vm11 = vcmask 392512   ;;  %vm88_vm12 = vcmask 326912   ;;  %vm95_vm13 = vcmask 261312  }
   0x6   :  { %s56_s28 = smov 3  ;;  %v129_v5 = vld [vmem:[%s233_s0 + $0x9] ss:$16 sm:%s49_s26]   ;;  %v128_v6 = vld [vmem:[%s233_s0 + $0xa] ss:$16 sm:%s42_s27]   ;;  %s159_s6 = smov 72  }
   0x7   :  { %v130_v7 = vld [vmem:[%s233_s0 + $0x8] ss:$16 sm:%s56_s28]   ;;  %s160_s7 = smov 80   ;;  %s161_s8 = smov 64   ;;  %vm102_vm14 = vcmask 195712   ;;  %vm109_vm15 = vcmask 130112  }
   0x8   :  { %s70_s9 = smov 3  ;;  %s63_s10 = smov 3 }
   0x9   :  { %s77_s11 = smov 3  ;;  %v132_v8 = vld [vmem:[%s233_s0 + $0x6] ss:$16 sm:%s70_s9]   ;;  %v131_v9 = vld [vmem:[%s233_s0 + $0x7] ss:$16 sm:%s63_s10]   ;;  %s162_s18 = smov 48  }
   0xa   :  { %16 = vrot.lane.b32.xlu0 %v124_v2, %s156_s23  ;;  %30 = vrot.lane.b32.xlu1 %v126_v3, %s158_s25  ;;  %v133_v10 = vld [vmem:[%s233_s0 + $0x5] ss:$16 sm:%s77_s11]   ;;  %s163_s19 = smov 56   ;;  %s164_s20 = smov 40  }
   0xb   :  { %s91_s21 = smov 3  ;;  %s84_s22 = smov 3 }
   0xc   :  { %s98_s23 = smov 3  ;;  %v135_v11 = vld [vmem:[%s233_s0 + $0x3] ss:$16 sm:%s91_s21]   ;;  %v134_v12 = vld [vmem:[%s233_s0 + $0x4] ss:$16 sm:%s84_s22]   ;;  %s165_s30 = smov 24  }
   0xd   :  { %44 = vrot.lane.b32.xlu2 %v128_v6, %s160_s7  ;;  %v136_v13 = vld [vmem:[%s233_s0 + $0x2] ss:$16 sm:%s98_s23]   ;;  %s166_s2 = smov 32   ;;  %s167_s3 = smov 16  }
   0xe   :  { %s105_s4 = smov 3  ;;  %s168_s7 = smov 8  }
   0xf   :  { %v137_v14 = vld [vmem:[%s233_s0 + $0x1] ss:$16 sm:%s105_s4]  }
  0x12   :  { %51 = vrot.lane.b32.xlu0 %v129_v5, %s159_s6  ;;  %58 = vrot.lane.b32.xlu1 %v130_v7, %s161_s8  ;;  %s2_s8 = smov 3 }
  0x13   :  { %v3_v15 = vld [vmem:[%s233_s0] ss:$16 sm:%s2_s8]  }
  0x14   :  { %5 = vst.msk [vmem:[#allocation0] ss:$8 sm:$0x3] %vm4_vm0, %v3_v15  }
  0x15   :  { %65 = vrot.lane.b32.xlu2 %v131_v9, %s163_s19 }
  0x1a   :  { %72 = vrot.lane.b32.xlu0 %v132_v8, %s162_s18  ;;  %79 = vrot.lane.b32.xlu1 %v133_v10, %s164_s20 }
  0x1d   :  { %86 = vrot.lane.b32.xlu2 %v134_v12, %s166_s2 }
  0x22   :  { %93 = vrot.lane.b32.xlu0 %v135_v11, %s165_s30  ;;  %100 = vrot.lane.b32.xlu1 %v136_v13, %s167_s3 }
  0x25   :  { %107 = vrot.lane.b32.xlu2 %v137_v14, %s168_s7 }
  0x5f   :  { %v38_v16 = vpop.permute.xlu2 %37  }
  0x67   :  { %v45_v17 = vpop.permute.xlu2 %44  }
  0x6f   :  { %v66_v19 = vpop.permute.xlu2 %65  }
  0x74   :  { %v10_v18 = vpop.permute.xlu0 %9   ;;  %v24_v20 = vpop.permute.xlu1 %23  }
  0x75   :  { %12 = vst.msk [vmem:[#allocation0] ss:$8 sm:$0x3] %vm11_vm1, %v10_v18  }
  0x77   :  { %v87_v22 = vpop.permute.xlu2 %86  }
  0x7c   :  { %v17_v21 = vpop.permute.xlu0 %16   ;;  %v31_v23 = vpop.permute.xlu1 %30  }
  0x7d   :  { %19 = vst.msk [vmem:[#allocation0] ss:$8 sm:$0x3] %vm18_vm2, %v17_v21  }
  0x7e   :  { %26 = vst.msk [vmem:[#allocation0] ss:$8 sm:$0x3] %vm25_vm3, %v24_v20  }
  0x7f   :  { %33 = vst.msk [vmem:[#allocation0] ss:$8 sm:$0x3] %vm32_vm4, %v31_v23   ;;  %v108_v25 = vpop.permute.xlu2 %107  }
  0x80   :  { %40 = vst.msk [vmem:[#allocation0] ss:$8 sm:$0x3] %vm39_vm5, %v38_v16  }
  0x81   :  { %47 = vst.msk [vmem:[#allocation0] ss:$8 sm:$0x3] %vm46_vm6, %v45_v17  }
  0x84   :  { %v52_v24 = vpop.permute.xlu0 %51   ;;  %v59_v26 = vpop.permute.xlu1 %58  }
  0x85   :  { %54 = vst.msk [vmem:[#allocation0] ss:$8 sm:$0x3] %vm53_vm7, %v52_v24  }
  0x86   :  { %61 = vst.msk [vmem:[#allocation0] ss:$8 sm:$0x3] %vm60_vm8, %v59_v26  }
  0x87   :  { %68 = vst.msk [vmem:[#allocation0] ss:$8 sm:$0x3] %vm67_vm9, %v66_v19  }
  0x8c   :  { %v73_v27 = vpop.permute.xlu0 %72   ;;  %v80_v28 = vpop.permute.xlu1 %79  }
  0x8d   :  { %75 = vst.msk [vmem:[#allocation0] ss:$8 sm:$0x3] %vm74_vm10, %v73_v27  }
  0x8e   :  { %82 = vst.msk [vmem:[#allocation0] ss:$8 sm:$0x3] %vm81_vm11, %v80_v28  }
  0x8f   :  { %89 = vst.msk [vmem:[#allocation0] ss:$8 sm:$0x3] %vm88_vm12, %v87_v22  }
  0x94   :  { %v94_v29 = vpop.permute.xlu0 %93   ;;  %v101_v30 = vpop.permute.xlu1 %100  }
  0x95   :  { %96 = vst.msk [vmem:[#allocation0] ss:$8 sm:$0x3] %vm95_vm13, %v94_v29  }
  0x96   :  { %103 = vst.msk [vmem:[#allocation0] ss:$8 sm:$0x3] %vm102_vm14, %v101_v30  }
  0x97   :  { %110 = vst.msk [vmem:[#allocation0] ss:$8 sm:$0x3] %vm109_vm15, %v108_v25  }
  0x9e   :  { %v113_v31 = vld [vmem:[#allocation0] sm:$0x1]  ;;  %v118_v32 = vld [vmem:[#allocation0 + $0x8] sm:$0x1] }
  0x9f   :  { %116 = vst [vmem:[%s234_s1] sm:$0x1] %v113_v31 }
  0xa0   :  { %138 = vst [vmem:[%s234_s1 + $0x1] sm:$0x1] %v118_v32 }

// kernel: tile.18
= control target key start
LH: loop header
LB: loop body
LE: loop exit
PB: predicated region body
PF: predicated region fallthrough
CT: control target
= control target key end

     0   :  { %s40_s0 = inlined_call_operand.vmem [shape: f32[8], index: 0, kind: input, shape index: {}]   ;;  %s41_s1 = inlined_call_operand.vmem [shape: f32[32,8], index: 1, kind: output, shape index: {}]  }
   0x1   :  { %v4_v0 = vld [vmem:[%s40_s0] ss:$0 sm:$0xff] }
   0x2   :  { %5 = vst [vmem:[%s41_s1] sm:$0xff] %v4_v0 }
   0x3   :  { %12 = vst [vmem:[%s41_s1 + $0x8] sm:$0xff] %v4_v0 }
   0x4   :  { %13 = vst [vmem:[%s41_s1 + $0x10] sm:$0xff] %v4_v0 }
   0x5   :  { %14 = vst [vmem:[%s41_s1 + $0x18] sm:$0xff] %v4_v0 }

// kernel: upsampler_block.3
= control target key start
LH: loop header
LB: loop body
LE: loop exit
PB: predicated region body
PF: predicated region fallthrough
CT: control target
= control target key end

     0   :  { %s246_s0 = inlined_call_operand.vmem [shape: bf16[64,256], index: 0, kind: input, shape index: {}]   ;;  %s247_s1 = inlined_call_operand.vmem [shape: f32[1,256], index: 1, kind: input, shape index: {}]   ;;  %s248_s2 = inlined_call_operand.vmem [shape: f32[1,256], index: 2, kind: input, shape index: {}]   ;;  %s249_s3 = inlined_call_operand.vmem [shape: f32[64,256], index: 3, kind: output, shape index: {}]  }
   0x1   :  { %v14_v0 = vld [vmem:[%s246_s0] sm:$0xff]  ;;  %v15_v7 = vld [vmem:[%s246_s0 + $0x8] sm:$0xff]  ;;  %v16_v8 = vld [vmem:[%s246_s0 + $0x10] sm:$0xff] }
   0x2   :  { %v38_v1 = vld [vmem:[%s247_s1] sm:$0x3]  ;;  %v22_v3 = vunpack.c.l.bf16 %v14_v0  ;;  %v23_v6 = vunpack.c.h.bf16 %v14_v0  ;;  %v17_v9 = vld [vmem:[%s246_s0 + $0x18] sm:$0xff]  ;;  %v24_v12 = vunpack.c.l.bf16 %v15_v7  ;;  %v25_v13 = vunpack.c.h.bf16 %v15_v7  ;;  %v19_v35 = vld [vmem:[%s246_s0 + $0x28] sm:$0xff] }
   0x3   :  { %v60_v2 = vld [vmem:[%s248_s2] sm:$0x3]  ;;  %v147_v4 = vperm.slane %v38_v1, 0  ;;  %v41_v10 = vperm.slane %v38_v1, 1  ;;  %v26_v15 = vunpack.c.l.bf16 %v16_v8  ;;  %v27_v16 = vunpack.c.h.bf16 %v16_v8  ;;  %v20_v40 = vld [vmem:[%s246_s0 + $0x30] sm:$0xff]  ;;  %v21_v41 = vld [vmem:[%s246_s0 + $0x38] sm:$0xff] }
   0x4   :  { %v149_v5 = vperm.slane %v60_v2, 0  ;;  %v160_v11 = vperm.slane %v60_v2, 1  ;;  %v28_v17 = vunpack.c.l.bf16 %v17_v9  ;;  %v29_v21 = vunpack.c.h.bf16 %v17_v9  ;;  %v18_v30 = vld [vmem:[%s246_s0 + $0x20] sm:$0xff] }
   0x5   :  { %v44_v14 = vmul.f32 %v147_v4, %v22_v3  ;;  %v45_v18 = vmul.f32 %v41_v10, %v23_v6  ;;  %v46_v19 = vmul.f32 %v147_v4, %v24_v12  ;;  %v47_v20 = vmul.f32 %v41_v10, %v25_v13 }
   0x6   :  { %v48_v23 = vmul.f32 %v147_v4, %v26_v15  ;;  %v49_v24 = vmul.f32 %v41_v10, %v27_v16  ;;  %v50_v25 = vmul.f32 %v147_v4, %v28_v17  ;;  %v51_v29 = vmul.f32 %v41_v10, %v29_v21 }
   0x7   :  { %v66_v22 = vadd.f32 %v149_v5, %v44_v14  ;;  %v67_v26 = vadd.f32 %v160_v11, %v45_v18  ;;  %v68_v27 = vadd.f32 %v149_v5, %v46_v19  ;;  %v69_v28 = vadd.f32 %v160_v11, %v47_v20 }
   0x8   :  { %v70_v32 = vadd.f32 %v149_v5, %v48_v23  ;;  %v71_v33 = vadd.f32 %v160_v11, %v49_v24  ;;  %v72_v34 = vadd.f32 %v149_v5, %v50_v25  ;;  %v73_v39 = vadd.f32 %v160_v11, %v51_v29 }
   0x9   :  { %v82_v31 = vmax.f32 %v66_v22, 0.0  ;;  %v83_v36 = vmax.f32 %v67_v26, 0.0  ;;  %v84_v37 = vmax.f32 %v68_v27, 0.0  ;;  %v85_v38 = vmax.f32 %v69_v28, 0.0 }
   0xa   :  { %v86_v42 = vmax.f32 %v70_v32, 0.0  ;;  %v87_v43 = vmax.f32 %v71_v33, 0.0  ;;  %v88_v44 = vmax.f32 %v72_v34, 0.0  ;;  %v30_v45 = vunpack.c.l.bf16 %v18_v30 }
   0xb   :  { %98 = vst [vmem:[%s249_s3] sm:$0xff] %v82_v31  ;;  %v89_v46 = vmax.f32 %v73_v39, 0.0  ;;  %v31_v47 = vunpack.c.h.bf16 %v18_v30  ;;  %v32_v48 = vunpack.c.l.bf16 %v19_v35  ;;  %v33_v49 = vunpack.c.h.bf16 %v19_v35 }
   0xc   :  { %99 = vst [vmem:[%s249_s3 + $0x8] sm:$0xff] %v83_v36  ;;  %v52_v50 = vmul.f32 %v147_v4, %v30_v45  ;;  %v34_v51 = vunpack.c.l.bf16 %v20_v40  ;;  %v35_v52 = vunpack.c.h.bf16 %v20_v40  ;;  %v36_v53 = vunpack.c.l.bf16 %v21_v41 }
   0xd   :  { %100 = vst [vmem:[%s249_s3 + $0x10] sm:$0xff] %v84_v37  ;;  %v53_v54 = vmul.f32 %v41_v10, %v31_v47  ;;  %v54_v55 = vmul.f32 %v147_v4, %v32_v48  ;;  %v55_v56 = vmul.f32 %v41_v10, %v33_v49  ;;  %v37_v57 = vunpack.c.h.bf16 %v21_v41 }
   0xe   :  { %101 = vst [vmem:[%s249_s3 + $0x18] sm:$0xff] %v85_v38  ;;  %v74_v58 = vadd.f32 %v149_v5, %v52_v50  ;;  %v56_v59 = vmul.f32 %v147_v4, %v34_v51  ;;  %v57_v60 = vmul.f32 %v41_v10, %v35_v52  ;;  %v58_v61 = vmul.f32 %v147_v4, %v36_v53 }
   0xf   :  { %102 = vst [vmem:[%s249_s3 + $0x20] sm:$0xff] %v86_v42  ;;  %v75_v62 = vadd.f32 %v160_v11, %v53_v54  ;;  %v76_v63 = vadd.f32 %v149_v5, %v54_v55  ;;  %v77_v0 = vadd.f32 %v160_v11, %v55_v56  ;;  %v59_v1 = vmul.f32 %v41_v10, %v37_v57 }
  0x10   :  { %103 = vst [vmem:[%s249_s3 + $0x28] sm:$0xff] %v87_v43  ;;  %v90_v2 = vmax.f32 %v74_v58, 0.0  ;;  %v78_v3 = vadd.f32 %v149_v5, %v56_v59  ;;  %v79_v4 = vadd.f32 %v160_v11, %v57_v60  ;;  %v80_v6 = vadd.f32 %v149_v5, %v58_v61 }
  0x11   :  { %104 = vst [vmem:[%s249_s3 + $0x30] sm:$0xff] %v88_v44  ;;  %v91_v7 = vmax.f32 %v75_v62, 0.0  ;;  %v92_v8 = vmax.f32 %v76_v63, 0.0  ;;  %v93_v9 = vmax.f32 %v77_v0, 0.0  ;;  %v81_v10 = vadd.f32 %v160_v11, %v59_v1 }
  0x12   :  { %105 = vst [vmem:[%s249_s3 + $0x38] sm:$0xff] %v89_v46  ;;  %v94_v12 = vmax.f32 %v78_v3, 0.0  ;;  %v95_v13 = vmax.f32 %v79_v4, 0.0  ;;  %v96_v5 = vmax.f32 %v80_v6, 0.0 }
  0x13   :  { %106 = vst [vmem:[%s249_s3 + $0x40] sm:$0xff] %v90_v2  ;;  %v97_v11 = vmax.f32 %v81_v10, 0.0 }
  0x14   :  { %107 = vst [vmem:[%s249_s3 + $0x48] sm:$0xff] %v91_v7 }
  0x15   :  { %108 = vst [vmem:[%s249_s3 + $0x50] sm:$0xff] %v92_v8 }
  0x16   :  { %109 = vst [vmem:[%s249_s3 + $0x58] sm:$0xff] %v93_v9 }
  0x17   :  { %110 = vst [vmem:[%s249_s3 + $0x60] sm:$0xff] %v94_v12 }
  0x18   :  { %111 = vst [vmem:[%s249_s3 + $0x68] sm:$0xff] %v95_v13 }
  0x19   :  { %112 = vst [vmem:[%s249_s3 + $0x70] sm:$0xff] %v96_v5 }
  0x1a   :  { %113 = vst [vmem:[%s249_s3 + $0x78] sm:$0xff] %v97_v11 }

// kernel: upsampler_block.2
= control target key start
LH: loop header
LB: loop body
LE: loop exit
PB: predicated region body
PF: predicated region fallthrough
CT: control target
= control target key end

     0   :  { %s995_s24 = smov 0   ;;  %s997_s25 = smov 0   ;;  %s1142_s0 = inlined_call_operand.vmem [shape: f32[2,16,17,4], index: 0, kind: input, shape index: {}]   ;;  %s1143_s1 = inlined_call_operand.vmem [shape: f32[2,16,17,4], index: 1, kind: input, shape index: {}]   ;;  %s1144_s2 = inlined_call_operand.vmem [shape: bf16[2,4,16], index: 2, kind: input, shape index: {}]   ;;  %s1145_s3 = inlined_call_operand.vmem [shape: bf16[4,4,16], index: 3, kind: input, shape index: {}]   ;;  %s1146_s4 = inlined_call_operand.vmem [shape: f32[1,16], index: 4, kind: input, shape index: {}]   ;;  %s1147_s5 = inlined_call_operand.vmem [shape: bf16[2,16,2,16,16], index: 5, kind: output, shape index: {0}]   ;;  %s1148_s6 = inlined_call_operand.vmem [shape: f32[2,1,1,16], index: 6, kind: output, shape index: {1}]   ;;  %s1149_s7 = inlined_call_operand.vmem [shape: f32[2,1,1,16], index: 7, kind: output, shape index: {2}]  }
   0x1   :  { %s999_s26 = smov 0  }
   0x2 LB: > { %s30_s27 = sadd.s32 1, %s937_s25  ;;  %p832_p0 = scmp.ge.s32.totalorder %s941_s26, 1  ;;  %s941_s26 = sphi %s999_s26, %s18_s26   ;;  %s937_s25 = sphi %s997_s25, %s1153_s25   ;;  %s933_s24 = sphi %s995_s24, %s1152_s24  }
   0x3   : > { %p32_p1 = scmp.ge.s32.totalorder %s30_s27, 2  ;;  %p286_p2 = scmp.lt.s32.totalorder %s941_s26, 3 }
   0x5   : > { %s1155_s27 = smov (%p32_p1, %s30_s27), 0  ;;  %p287_p3 = pnand %p832_p0, %p286_p2 }
   0x6   : > { %p351_p4 = scmp.lt.s32.totalorder (!%p287_p3), %s933_s24, 1  ;;  %s1049_s28 = smov (!%p287_p3), 0  }
   0x7   : > { %290 = sbr.rel (%p287_p3) target bundleno = 200 (0xc8), region = 40 }
   0xc   : > { %v1016_v0 = vld [vmem:[%s1146_s4] sm:$0x1]  ;;  %s1157_s24 = smov (!%p351_p4, %s933_s24), 1  ;;  %v1045_v1 = vmov 0.0   ;;  %v1047_v2 = vmov 0.0  }
   0xd   : > { %s858_s30 = smul.u32 384, %s1157_s24  ;;  %s855_s8 = sshll.u32 %s1157_s24, 8 }
   0xe   : > { %s1025_s11 = scalar_lea.vmem %s1147_s5, %s855_s8  ;;  %s388_s14 = scalar_lea.vmem %s1148_s6, %s1157_s24 }
   0xf   : > { %s1034_s17 = scalar_lea.vmem %s1142_s0, %s858_s30  ;;  %s1039_s20 = scalar_lea.vmem %s1143_s1, %s858_s30 }
  0x10   : > { %s394_s23 = scalar_lea.vmem %s1149_s7, %s1157_s24 }
  0x11 LB: >> { %v837_v3 = vld [vmem:[%s1144_s2 + $0x2] sm:$0x3]  ;;  %vm427_vm0 = vcmask 1041408   ;;  %v420_v4 = vld [vmem:[%s1144_s2] sm:$0x3]  ;;  %s405_s16 = smul.u32 24, %s953_s28  ;;  %s953_s28 = sphi %s1049_s28, %s402_s28   ;;  %v949_v2 = vphi %v1047_v2, %v1151_v2   ;;  %v945_v1 = vphi %v1045_v1, %v1150_v1  }
  0x12   : >> { %v429_v5 = vsel %vm427_vm0, %v837_v3, 0  ;;  %v449_v6 = vsel %vm427_vm0, %v420_v4, 0  ;;  %v840_v7 = vld [vmem:[%s1145_s3 + $0x2] sm:$0x3]  ;;  %v470_v8 = vld [vmem:[%s1145_s3] sm:$0x3] }
  0x13   : >> { %438 = vmatpush.bf16.msra.mxu0 %v429_v5  ;;  %458 = vmatpush.bf16.msra.mxu1 %v449_v6  ;;  %v474_v9 = vsel %vm427_vm0, %v840_v7, 0  ;;  %v491_v10 = vsel %vm427_vm0, %v470_v8, 0  ;;  %v843_v11 = vld [vmem:[%s1145_s3 + $0x4] sm:$0x3]  ;;  %v845_v13 = vld [vmem:[%s1145_s3 + $0x6] sm:$0x3]  ;;  %s406_s29 = scalar_lea.vmem %s1034_s17, %s405_s16  ;;  %s413_s30 = scalar_lea.vmem %s1039_s20, %s405_s16 }
  0x14   : >> { %483 = vmatpush.bf16.msra.mxu2 %v474_v9  ;;  %500 = vmatpush.bf16.msra.mxu3 %v491_v10  ;;  %v513_v12 = vsel %vm427_vm0, %v843_v11, 0  ;;  %v537_v14 = vsel %vm427_vm0, %v845_v13, 0  ;;  %v410_v15 = vld [vmem:[%s406_s29 + $0x1] sm:$0xff]  ;;  %v411_v16 = vld [vmem:[%s406_s29 + $0x9] sm:$0xff]  ;;  %vm423_vm1 = vcmask 31744   ;;  %v466_v28 = vperm.slane %v1016_v0, 0 }
  0x15   : >> { %v407_v17 = vld [vmem:[%s406_s29] sm:$0xff]  ;;  %v412_v18 = vpack.c.bf16 %v411_v16, %v410_v15  ;;  %v408_v19 = vld [vmem:[%s406_s29 + $0x8] sm:$0xff]  ;;  %s856_s8 = sshll.u32 %s953_s28, 4  ;;  %vm562_vm2 = vcmask 125952   ;;  %vm572_vm3 = vcmask 130048   ;;  %s402_s28 = sadd.s32 1, %s953_s28  }
  0x16   : >> { %v409_v20 = vpack.c.bf16 %v408_v19, %v407_v17  ;;  %v414_v21 = vld [vmem:[%s413_s30] sm:$0xff]  ;;  %v415_v22 = vld [vmem:[%s413_s30 + $0x8] sm:$0xff]  ;;  %s1096_s9 = scalar_lea.vmem %s1025_s11, %s856_s8  ;;  %p399_p5 = scmp.ge.s32.totalorder %s402_s28, 16  }
  0x17   : >> { %522 = vmatpush.bf16.msrb.mxu0 %v513_v12  ;;  %546 = vmatpush.bf16.msrb.mxu1 %v537_v14  ;;  %v417_v23 = vld [vmem:[%s413_s30 + $0x1] sm:$0xff]  ;;  %v418_v24 = vld [vmem:[%s413_s30 + $0x9] sm:$0xff]  ;;  %v416_v25 = vpack.c.bf16 %v415_v22, %v414_v21  ;;  %vm617_vm4 = vcmask (%p399_p5), 122880  }
  0x18   : >> { %838 = vmatmul.msk.bf16.vlgmr.msra.gmra.mxu0 %vm423_vm1, %v412_v18  ;;  %841 = vmatmul.msk.bf16.vlgmr.msra.gmra.mxu2 %vm423_vm1, %v412_v18  ;;  %v419_v26 = vpack.c.bf16 %v418_v24, %v417_v23 }
  0x19   : >> { %839 = vmatmul.msk.bf16.vlgmr.msra.gmra.mxu1 %vm423_vm1, %v409_v20  ;;  %842 = vmatmul.msk.bf16.vlgmr.msra.gmra.mxu3 %vm423_vm1, %v409_v20 }
  0x28   : >> { %844 = vmatmul.msk.bf16.vlgmr.msrb.gmra.mxu0 %vm423_vm1, %v416_v25 }
  0x29   : >> { %846 = vmatmul.msk.bf16.vlgmr.msrb.gmra.mxu1 %vm423_vm1, %v419_v26 }
  0x95   : >> { %v440_v27 = vpop.f32.mrf.mxu0 }
  0x96   : >> { %v460_v29 = vpop.f32.mrf.mxu1 }
  0x97   : >> { %v461_v30 = vadd.f32 %v460_v29, %v440_v27 }
  0x99   : >> { %v468_v31 = vadd.f32 %v466_v28, %v461_v30 }
  0x9b   : >> { %v557_v32 = vpack.c.bf16 %v468_v31, %v468_v31  ;;  %v485_v35 = vpop.f32.mrf.mxu2  ;;  %v593_v39 = vmul.f32 %v468_v31, %v468_v31  ;;  %v573_v44 = vsel %vm572_vm3, %v468_v31, 0.0 }
  0x9c   : >> { %v502_v36 = vpop.f32.mrf.mxu3 }
  0x9d   : >> { %563 = vst.msk [vmem:[%s1096_s9] sm:$0xf] %vm562_vm2, %v557_v32  ;;  %v442_v33 = vpop.f32.mrf.mxu0  ;;  %v503_v40 = vadd.f32 %v502_v36, %v485_v35  ;;  %v595_v48 = vsel %vm572_vm3, %v593_v39, 0.0 }
  0x9e   : >> { %v462_v34 = vpop.f32.mrf.mxu1 }
  0x9f   : >> { %v463_v37 = vadd.f32 %v462_v34, %v442_v33 }
  0xa1   : >> { %v469_v38 = vadd.f32 %v466_v28, %v463_v37 }
  0xa3   : >> { %v558_v41 = vpack.c.bf16 %v469_v38, %v469_v38  ;;  %v574_v42 = vsel %vm572_vm3, %v469_v38, 0.0  ;;  %v594_v43 = vmul.f32 %v469_v38, %v469_v38  ;;  %v487_v54 = vpop.f32.mrf.mxu2 }
  0xa4   : >> { %v575_v45 = vadd.f32 %v574_v42, %v573_v44  ;;  %v504_v55 = vpop.f32.mrf.mxu3 }
  0xa5   : >> { %564 = vst.msk [vmem:[%s1096_s9 + $0x4] sm:$0xf] %vm562_vm2, %v558_v41  ;;  %v596_v46 = vsel %vm572_vm3, %v594_v43, 0.0  ;;  %v524_v47 = vpop.f32.mrf.mxu0  ;;  %v505_v58 = vadd.f32 %v504_v55, %v487_v54 }
  0xa6   : >> { %v529_v49 = vadd.f32 %v524_v47, %v503_v40  ;;  %v548_v50 = vpop.f32.mrf.mxu1  ;;  %v597_v51 = vadd.f32 %v596_v46, %v595_v48  ;;  %v576_v53 = vrot.slane %v575_v45, 4 }
  0xa8   : >> { %v553_v52 = vadd.f32 %v548_v50, %v529_v49  ;;  %v598_v57 = vrot.slane %v597_v51, 4  ;;  %v577_v60 = vadd.f32 %v576_v53, %v575_v45 }
  0xaa   : >> { %v555_v56 = vadd.f32 %v553_v52, %v466_v28  ;;  %v599_v63 = vadd.f32 %v598_v57, %v597_v51  ;;  %v578_v5 = vrot.slane %v577_v60, 2 }
  0xac   : >> { %v565_v59 = vpack.c.bf16 %v555_v56, %v555_v56  ;;  %v605_v6 = vmul.f32 %v555_v56, %v555_v56  ;;  %v600_v8 = vrot.slane %v599_v63, 2  ;;  %v583_v9 = vsel %vm572_vm3, %v555_v56, 0.0 }
  0xad   : >> { %v526_v61 = vpop.f32.mrf.mxu0  ;;  %v579_v13 = vadd.f32 %v578_v5, %v577_v60 }
  0xae   : >> { %851 = vst.msk [vmem:[%s1096_s9 + $0x8] sm:$0xf] %vm562_vm2, %v565_v59  ;;  %v530_v62 = vadd.f32 %v526_v61, %v505_v58  ;;  %v550_v3 = vpop.f32.mrf.mxu1  ;;  %v607_v15 = vsel %vm572_vm3, %v605_v6, 0.0  ;;  %v601_v17 = vadd.f32 %v600_v8, %v599_v63 }
  0xaf   : >> { %v580_v20 = vrot.slane %v579_v13, 1 }
  0xb0   : >> { %v554_v4 = vadd.f32 %v550_v3, %v530_v62  ;;  %v602_v23 = vrot.slane %v601_v17, 1 }
  0xb1   : >> { %v581_v26 = vadd.f32 %v580_v20, %v579_v13 }
  0xb2   : >> { %v556_v7 = vadd.f32 %v554_v4, %v466_v28  ;;  %v603_v29 = vadd.f32 %v602_v23, %v601_v17 }
  0xb3   : >> { %v582_v32 = vadd.f32 %v949_v2, %v581_v26 }
  0xb4   : >> { %v566_v10 = vpack.c.bf16 %v556_v7, %v556_v7  ;;  %v584_v11 = vsel %vm572_vm3, %v556_v7, 0.0  ;;  %v606_v12 = vmul.f32 %v556_v7, %v556_v7  ;;  %v604_v35 = vadd.f32 %v945_v1, %v603_v29 }
  0xb5   : >> { %v585_v14 = vadd.f32 %v584_v11, %v583_v9 }
  0xb6   : >> { %852 = vst.msk [vmem:[%s1096_s9 + $0xc] sm:$0xf] %vm562_vm2, %v566_v10  ;;  %v608_v16 = vsel %vm572_vm3, %v606_v12, 0.0 }
  0xb7   : >> { %v586_v18 = vrot.slane %v585_v14, 4  ;;  %v609_v19 = vadd.f32 %v608_v16, %v607_v15 }
  0xb9   : >> { %v587_v21 = vadd.f32 %v586_v18, %v585_v14  ;;  %v610_v22 = vrot.slane %v609_v19, 4 }
  0xbb   : >> { %v588_v24 = vrot.slane %v587_v21, 2  ;;  %v611_v25 = vadd.f32 %v610_v22, %v609_v19 }
  0xbd   : >> { %v589_v27 = vadd.f32 %v588_v24, %v587_v21  ;;  %v612_v28 = vrot.slane %v611_v25, 2 }
  0xbf   : >> { %v590_v30 = vrot.slane %v589_v27, 1  ;;  %v613_v31 = vadd.f32 %v612_v28, %v611_v25 }
  0xc1   : >> { %v591_v33 = vadd.f32 %v590_v30, %v589_v27  ;;  %v614_v34 = vrot.slane %v613_v31, 1 }
  0xc3   : >> { %v592_v36 = vadd.f32 %v591_v33, %v582_v32   ;;  %v615_v37 = vadd.f32 %v614_v34, %v613_v31  ;;  %401 = sbr.rel (!%p399_p5) target bundleno = 17 (0x11), region = 112 }
  0xc5   : >> { %v616_v38 = vadd.f32 %v615_v37, %v604_v35   ;;  %v1151_v2 = vmov %v592_v36  ;;  %618 = vst.msk [vmem:[%s388_s14] sm:$0x1] (%p399_p5), %vm617_vm4, %v592_v36 }
  0xc7   : >> { %v1150_v1 = vmov %v616_v38  ;;  %619 = vst.msk [vmem:[%s394_s23] sm:$0x1] (%p399_p5), %vm617_vm4, %v616_v38 }
  0xc8 PF: > { %s18_s26 = sadd.s32 1, %s941_s26   ;;  %s1152_s24 = smov %s937_s25 }
  0xc9   : > { %p15_p6 = scmp.ge.s32.totalorder %s18_s26, 4   ;;  %s1153_s25 = smov %s1155_s27 }
  0xcb   :  { %17 = sbr.rel (!%p15_p6) target bundleno = 2 (0x2), region = 123 }

</bundles_post_ra>
